<compile_context>
chip_gen: v6e
topology: v6e:2x2x1
jax: 0.10.0
libtpu: 0.0.40
codegen_flags: <defaults>
</compile_context>

<pallas_src>
import functools
import math

import jax
import jax.numpy as jnp
from jax.experimental import pallas as pl
from jax.experimental.pallas import tpu as pltpu


def _downsample_conv_kernel(x_ref, sel_ref, w_ref, o_ref, *, mxu_conv):
    # x_ref:   (C_in, step*TL)   full-length slab for this (batch, length-tile)
    # sel_ref: (step*TL, TL)     0/1 selection matrix, sel[step*j, j] = 1 (resident)
    # w_ref:   (C_out, C_in)     1x1 conv weight (resident)
    # o_ref:   (C_out, TL)       lane-dense output tile
    #
    # Fused nearest-neighbour downsample: x_even[c, j] = x[c, step*j], realised as a
    # matmul with a 0/1 matrix (exact in f32; MXU is idle under this mem-bound kernel).
    x_even = jnp.dot(
        x_ref[...], sel_ref[...], preferred_element_type=jnp.float32
    )  # (C_in, TL)

    if mxu_conv:
        out = jnp.dot(w_ref[...], x_even, preferred_element_type=jnp.float32)
    else:
        # Tiny channel counts: VPU broadcast-FMAs, no second MXU round trip.
        w = w_ref[...].astype(jnp.float32)
        c_in = x_even.shape[0]
        out = w[:, 0:1] * x_even[0:1, :]            # (C_out,1)*(1,TL) -> (C_out,TL)
        for c in range(1, c_in):
            out = out + w[:, c:c + 1] * x_even[c:c + 1, :]

    o_ref[...] = out.astype(o_ref.dtype)


def _pick_length_tile(l_out, max_tile=512):
    """Largest lane-dense (multiple of 128) tile <= max_tile that divides l_out."""
    if l_out <= max_tile:
        return l_out
    for cand in range(max_tile, 0, -128):
        if l_out % cand == 0:
            return cand
    # TODO(synk): pad l_out up to a multiple of 128 instead of one giant block.
    return l_out


def downsample_forward(x, weight, downsample_rate=0.5, *, max_len_tile=512):
    """Equivalent of DownSample.forward.

    x:      (N, C_in, L)      float32, PyTorch NCL layout
    weight: (C_out, C_in, 1)  Conv1d weight, kernel_size=1, no bias
    returns (N, C_out, floor(L * downsample_rate))
    """
    n, c_in, length = x.shape
    c_out = weight.shape[0]
    l_out = int(math.floor(length * downsample_rate))
    assert l_out >= 1
    step = length // l_out
    assert step >= 1

    # PyTorch nearest mapping: src = floor(dst * L / l_out).  This equals a uniform
    # stride `step` iff L % l_out <= 1 (always true for rate=0.5, any L).
    if (length - step * l_out) > 1:
        # TODO(synk): non-uniform nearest-neighbour index map (1/rate not an integer).
        raise NotImplementedError(
            "downsample_forward only supports rates with a uniform stride mapping "
            "(e.g. 0.5); got rate=%r with L=%d" % (downsample_rate, length))

    if length != step * l_out:
        x = x[:, :, : step * l_out]   # drop the single trailing remainder element

    w2d = weight[:, :, 0]             # (C_out, C_in)

    tl = _pick_length_tile(l_out, max_len_tile)
    n_lt = l_out // tl

    # 0/1 selection matrix: sel[i, j] = 1 iff i == step*j.  Resident in VMEM.
    sel = (jnp.arange(step * tl)[:, None] == step * jnp.arange(tl)[None, :]
           ).astype(x.dtype)

    mxu_conv = (c_in >= 128) or (c_out >= 128)
    kernel = functools.partial(_downsample_conv_kernel, mxu_conv=mxu_conv)

    itemsize = jnp.dtype(x.dtype).itemsize
    flops = 2 * n * l_out * (c_in * step * tl + c_out * c_in)
    bytes_accessed = (x.size + sel.size + w2d.size + n * c_out * l_out) * itemsize

    out = pl.pallas_call(
        kernel,
        out_shape=jax.ShapeDtypeStruct((n, c_out, l_out), x.dtype),
        grid_spec=pl.GridSpec(
            grid=(n, n_lt),
            in_specs=[
                # full-length x slab for this (batch, length-tile); one HBM pass
                pl.BlockSpec((None, c_in, step * tl), lambda b, t: (b, 0, t)),
                # selection matrix, resident across the whole grid
                pl.BlockSpec((step * tl, tl), lambda b, t: (0, 0)),
                # full weight, resident across the whole grid
                pl.BlockSpec((c_out, c_in), lambda b, t: (0, 0)),
            ],
            out_specs=pl.BlockSpec((None, c_out, tl), lambda b, t: (b, 0, t)),
        ),
        compiler_params=pltpu.CompilerParams(
            dimension_semantics=("parallel", "parallel"),
            vmem_limit_bytes=32 * 1024 * 1024,
        ),
        cost_estimate=pl.CostEstimate(
            flops=flops, transcendentals=0, bytes_accessed=bytes_accessed),
    )(x, sel, w2d)
    return out


if __name__ == "__main__":
    # Small shapes consistent with the module: N=2, C_in=4, C_out=8, L=16.
    key = jax.random.PRNGKey(0)
    k_x, k_w = jax.random.split(key)

    N, C_IN, C_OUT, L = 2, 4, 8, 16
    x = jax.random.normal(k_x, (N, C_IN, L), dtype=jnp.float32)
    weight = jax.random.normal(k_w, (C_OUT, C_IN, 1), dtype=jnp.float32) * 0.1

    out = downsample_forward(x, weight, downsample_rate=0.5)
    out = jax.block_until_ready(out)

    # Reference (same semantics as the PyTorch module).
    ref = jnp.einsum("oc,ncl->nol", weight[:, :, 0], x[:, :, ::2])
    assert out.shape == (N, C_OUT, L // 2), out.shape
    assert jnp.allclose(out, ref, atol=1e-5, rtol=1e-5), float(
        jnp.max(jnp.abs(out - ref)))

    print("KERNEL_OK")
</pallas_src>

<mosaic_0001>
module attributes {stable_mosaic.version = 11 : i64} {
  func.func @_downsample_conv_kernel(%arg0: i32, %arg1: i32, %arg2: memref<1x4x16xf32, #tpu.memory_space<vmem>>, %arg3: memref<16x8xf32, #tpu.memory_space<vmem>>, %arg4: memref<8x4xf32, #tpu.memory_space<vmem>>, %arg5: memref<1x8x8xf32, #tpu.memory_space<vmem>>) attributes {dimension_semantics = [#tpu.dimension_semantics<parallel>, #tpu.dimension_semantics<parallel>], iteration_bounds = array<i64: 2, 1>, scalar_prefetch = 0 : i64, scratch_operands = 0 : i64, tpu.core_type = #tpu.core_type<tc>, window_params = [{transform_indices = @transform_0, window_bounds = array<i64: 1, 4, 16>}, {pipeline_mode = #tpu.pipeline_mode<synchronous>, transform_indices = @transform_1, window_bounds = array<i64: 16, 8>}, {pipeline_mode = #tpu.pipeline_mode<synchronous>, transform_indices = @transform_2, window_bounds = array<i64: 8, 4>}, {transform_indices = @transform_3, window_bounds = array<i64: 1, 8, 8>}]} {
    %c0 = arith.constant 0 : index
    %c0_0 = arith.constant 0 : index
    %c0_1 = arith.constant 0 : index
    %0 = vector.load %arg2[%c0, %c0_0, %c0_1] : memref<1x4x16xf32, #tpu.memory_space<vmem>>, vector<1x4x16xf32>
    %1 = vector.shape_cast %0 : vector<1x4x16xf32> to vector<4x16xf32>
    %c0_2 = arith.constant 0 : index
    %c0_3 = arith.constant 0 : index
    %2 = vector.load %arg3[%c0_2, %c0_3] : memref<16x8xf32, #tpu.memory_space<vmem>>, vector<16x8xf32>
    %cst = arith.constant dense<0.000000e+00> : vector<4x8xf32>
    %3 = tpu.matmul %1, %2, %cst {dimension_numbers = #tpu.dot_dimension_numbers<[1], [0], [0], [1], [0, 0, 1, 1], [], []>} : vector<4x16xf32>, vector<16x8xf32>, vector<4x8xf32> -> vector<4x8xf32>
    %c0_4 = arith.constant 0 : index
    %c0_5 = arith.constant 0 : index
    %4 = vector.load %arg4[%c0_4, %c0_5] : memref<8x4xf32, #tpu.memory_space<vmem>>, vector<8x4xf32>
    %5 = vector.extract_strided_slice %4 {offsets = [0, 0], sizes = [8, 1], strides = [1, 1]} : vector<8x4xf32> to vector<8x1xf32>
    %6 = vector.extract_strided_slice %3 {offsets = [0, 0], sizes = [1, 8], strides = [1, 1]} : vector<4x8xf32> to vector<1x8xf32>
    %7 = vector.broadcast %5 : vector<8x1xf32> to vector<8x8xf32>
    %8 = vector.broadcast %6 : vector<1x8xf32> to vector<8x8xf32>
    %9 = arith.mulf %7, %8 : vector<8x8xf32>
    %10 = vector.extract_strided_slice %4 {offsets = [0, 1], sizes = [8, 1], strides = [1, 1]} : vector<8x4xf32> to vector<8x1xf32>
    %11 = vector.extract_strided_slice %3 {offsets = [1, 0], sizes = [1, 8], strides = [1, 1]} : vector<4x8xf32> to vector<1x8xf32>
    %12 = vector.broadcast %10 : vector<8x1xf32> to vector<8x8xf32>
    %13 = vector.broadcast %11 : vector<1x8xf32> to vector<8x8xf32>
    %14 = arith.mulf %12, %13 : vector<8x8xf32>
    %15 = arith.addf %9, %14 : vector<8x8xf32>
    %16 = vector.extract_strided_slice %4 {offsets = [0, 2], sizes = [8, 1], strides = [1, 1]} : vector<8x4xf32> to vector<8x1xf32>
    %17 = vector.extract_strided_slice %3 {offsets = [2, 0], sizes = [1, 8], strides = [1, 1]} : vector<4x8xf32> to vector<1x8xf32>
    %18 = vector.broadcast %16 : vector<8x1xf32> to vector<8x8xf32>
    %19 = vector.broadcast %17 : vector<1x8xf32> to vector<8x8xf32>
    %20 = arith.mulf %18, %19 : vector<8x8xf32>
    %21 = arith.addf %15, %20 : vector<8x8xf32>
    %22 = vector.extract_strided_slice %4 {offsets = [0, 3], sizes = [8, 1], strides = [1, 1]} : vector<8x4xf32> to vector<8x1xf32>
    %23 = vector.extract_strided_slice %3 {offsets = [3, 0], sizes = [1, 8], strides = [1, 1]} : vector<4x8xf32> to vector<1x8xf32>
    %24 = vector.broadcast %22 : vector<8x1xf32> to vector<8x8xf32>
    %25 = vector.broadcast %23 : vector<1x8xf32> to vector<8x8xf32>
    %26 = arith.mulf %24, %25 : vector<8x8xf32>
    %27 = arith.addf %21, %26 : vector<8x8xf32>
    %c0_6 = arith.constant 0 : index
    %c0_7 = arith.constant 0 : index
    %c0_8 = arith.constant 0 : index
    %28 = vector.load %arg5[%c0_6, %c0_7, %c0_8] : memref<1x8x8xf32, #tpu.memory_space<vmem>>, vector<1x8x8xf32>
    %29 = vector.shape_cast %28 : vector<1x8x8xf32> to vector<8x8xf32>
    %30 = vector.shape_cast %27 : vector<8x8xf32> to vector<1x8x8xf32>
    tpu.vector_store %arg5[%c0_6, %c0_7, %c0_8], %30 {strides = array<i32>} : memref<1x8x8xf32, #tpu.memory_space<vmem>>, vector<1x8x8xf32>,
    return
  }
  func.func @transform_0(%arg0: i32, %arg1: i32) -> (i32, i32, i32) {
    %c0_i32 = arith.constant 0 : i32
    %c0_i32_0 = arith.constant 0 : i32
    return %arg0, %c0_i32, %arg1 : i32, i32, i32
  }
  func.func @transform_1(%arg0: i32, %arg1: i32) -> (i32, i32) {
    %c0_i32 = arith.constant 0 : i32
    %c0_i32_0 = arith.constant 0 : i32
    %c0_i32_1 = arith.constant 0 : i32
    return %c0_i32, %c0_i32_0 : i32, i32
  }
  func.func @transform_2(%arg0: i32, %arg1: i32) -> (i32, i32) {
    %c0_i32 = arith.constant 0 : i32
    %c0_i32_0 = arith.constant 0 : i32
    %c0_i32_1 = arith.constant 0 : i32
    return %c0_i32, %c0_i32_0 : i32, i32
  }
  func.func @transform_3(%arg0: i32, %arg1: i32) -> (i32, i32, i32) {
    %c0_i32 = arith.constant 0 : i32
    %c0_i32_0 = arith.constant 0 : i32
    return %arg0, %c0_i32, %arg1 : i32, i32, i32
  }
}

</mosaic_0001>

<bundles_post_ra>
// kernel: tpu_custom_call.1
= control target key start
LH: loop header
LB: loop body
LE: loop exit
PB: predicated region body
PF: predicated region fallthrough
CT: control target
= control target key end

     0   :  { %8 = vsyncpa [#allocation3], 0  ;;  %s698_s0 = inlined_call_operand.vmem [shape: f32[2,4,16], index: 0, kind: input, shape index: {}]   ;;  %s699_s1 = inlined_call_operand.vmem [shape: f32[16,8], index: 1, kind: input, shape index: {}]   ;;  %s700_s2 = inlined_call_operand.vmem [shape: f32[8,4], index: 2, kind: input, shape index: {}]   ;;  %s701_s3 = inlined_call_operand.hbm [shape: f32[2,8,8], index: 3, kind: output, shape index: {}]  }
   0x1   :  { %10 = vsyncpa [#allocation3 + $0x1], 0  ;;  %s590_s12 = smov 0   ;;  %s592_s13 = smov 0  }
   0x2   :  { %s594_s14 = smov 0   ;;  %s596_s15 = smov 0  }
   0x3   :  { %s598_s16 = smov 0   ;;  %s600_s17 = smov 0  }
   0x4 LB: > { %s397_s18 = sadd.s32 4294967295, %s561_s17   ;;  %s398_s19 = sadd.s32 4294967294, %s561_s17   ;;  %s561_s17 = sphi %s600_s17, %s16_s17   ;;  %s557_s16 = sphi %s598_s16, %s708_s16   ;;  %s553_s15 = sphi %s596_s15, %s707_s15   ;;  %s549_s14 = sphi %s594_s14, %s706_s14   ;;  %s545_s13 = sphi %s592_s13, %s705_s13   ;;  %s541_s12 = sphi %s590_s12, %s704_s12  }
   0x5   : > { %s28_s20 = sadd.s32 1, %s557_s16  ;;  %s107_s21 = sadd.s32 1, %s549_s14 }
   0x6   : > { %p30_p0 = scmp.ge.s32.totalorder %s28_s20, 2  ;;  %p117_p1 = scmp.ne.s32.totalorder %s549_s14, %s545_s13 }
   0x7   : > { %p118_p2 = scmp.eq.s32.totalorder %s397_s18, 1  ;;  %p123_p3 = scmp.ne.s32.totalorder %s545_s13, %s541_s12 }
   0x8   : > { %s710_s20 = smov (%p30_p0, %s28_s20), 0  ;;  %p124_p5 = scmp.eq.s32.totalorder %s398_s19, 1 }
   0x9   : > { %p630_p4 = por %p118_p2, %p117_p1  ;;  %s102_s23 = ssub.s32 %s557_s16, %s710_s20 }
   0xa   : > { %p401_p6 = scmp.ge.s32.totalorder %s561_s17, 1  ;;  %p105_p7 = scmp.eq.s32.totalorder %s102_s23, 0 }
   0xb   : > { %p637_p8 = por %p124_p5, %p123_p3  ;;  %p158_p9 = scmp.lt.s32.totalorder %s561_s17, 3 }
   0xc   : > { %s643_s25 = scalar_select %p105_p7, %s549_s14, %s107_s21  }
   0xd   : > { %p159_p10 = pnand %p401_p6, %p158_p9 }
   0xe   : > { %p184_p11 = scmp.lt.s32.totalorder (!%p159_p10), %s553_s15, 1  ;;  %s181_s10 = sand.u32 (!%p159_p10), 1, %s545_s13  }
   0xf   : > { %162 = sbr.rel (%p159_p10) target bundleno = 241 (0xf1), region = 32  ;;  %s402_s11 = sshll.u32 (!%p159_p10), %s181_s10, 3 }
  0x10   : > { %s406_s18 = sshll.u32 (!%p159_p10), %s553_s15, 7  ;;  %s183_s19 = scalar_lea.vmem (!%p159_p10), [#allocation2], %s402_s11 }
  0x11   : > { %s326_s21 = sshll.u32 (!%p159_p10), %s183_s19, 4  ;;  %s324_s27 = scalar_lea.hbm (!%p159_p10), %s701_s3, %s406_s18  ;;  %s327_s21 = int_to_ptr.vmem [resolvable:$true] %s326_s21 }
  0x12   : > { %s312_s28 = scalar_lea.sflag (!%p159_p10), [#allocation3], %s181_s10  ;;  %s485_s29 = scalar_lea.vmem (!%p159_p10), %s327_s21, 128 }
  0x13   : > { %p486_p12 = scmp.ne.s32.totalorder (!%p159_p10), %s327_s21, %s485_s29  ;;  %s569_s30 = smov (!%p159_p10), [#allocation2]  }
  0x14   : > { %v193_v0 = vld [vmem:[%s699_s1 + $0x8] sm:$0xff]  ;;  %v563_v1 = vmov 0.0   ;;  %v192_v2 = vld [vmem:[%s699_s1] sm:$0xff]  ;;  %vm564_vm0 = vmmov 0   ;;  %s185_s5 = scalar_select %p184_p11, %s553_s15, 1  ;;  %v565_v4 = vmov 2   ;;  %v274_v9 = vlaneseq }
  0x15   : > { %412 = vmatprep.subr.mxu0 %v563_v1  ;;  %416 = vmatprep.mubr.msk.f32.mxu0 %vm564_vm0, %v563_v1  ;;  %v268_v3 = vld [vmem:[%s700_s2] sm:$0xff]  ;;  %v566_v5 = vmov 0   ;;  %vm194_vm1 = vcmask 130048   ;;  %v567_v7 = vmov 3   ;;  %v568_v8 = vmov 1   ;;  %p487_p13 = pnand %p486_p12, %p630_p4  ;;  %s489_s15 = sshll.u32 %s569_s30, 4  ;;  %s490_s15 = int_to_ptr.vmem [resolvable:$false] %s489_s15 }
  0x16   : > { %413 = vmatpush3.msra.mxu0 %v193_v0  ;;  %482 = vset.pattern.permute.xlu1 %v565_v4  ;;  %s403_s6 = sshll.u32 %s185_s5, 2  ;;  %v275_v10 = vshrl.u32 %v274_v9, 7  ;;  %vm309_vm2 = vcmask 64512   ;;  %s491_s4 = scalar_lea.vmem %s490_s15, 256 }
  0x17   : > { %414 = vmatprep.subr.mxu0 %v563_v1  ;;  %480 = vset.pattern.permute.xlu0 %v566_v5  ;;  %s190_s9 = scalar_lea.vmem %s698_s0, %s403_s6  ;;  %p488_p0 = pneg %p487_p13 }
  0x18   : > { %415 = vmatpush3.msra.mxu0 %v192_v2  ;;  %290 = vperm.xlu1 %482, %v268_v3   ;;  %v191_v6 = vld [vmem:[%s190_s9] sm:$0xf]  ;;  %v276_v12 = vsub.s32 0, %v275_v10  ;;  %v295_v13 = vsub.s32 2, %v275_v10  ;;  %v285_v14 = vsub.s32 1, %v275_v10  ;;  %v305_v16 = vsub.s32 3, %v275_v10  ;;  %p492_p1 = scmp.lt.s32.totalorder %s327_s21, %s490_s15  ;;  %p493_p2 = scmp.lt.s32.totalorder %s491_s4, %s485_s29 }
  0x19   : > { %271 = vperm.xlu0 %480, %v268_v3   ;;  %417 = vmatmul.mubr.msk.f32.vlgmr.msra.gmra.mxu0 %vm194_vm1, %v191_v6 }
  0x1a   : > { %p494_p3 = por %p493_p2, %p492_p1 }
  0x1c   : > { %483 = vset.pattern.permute.xlu1 %v567_v7  ;;  %p495_p5 = pnand %p494_p3, %p488_p0 }
  0x1d   : > { %481 = vset.pattern.permute.xlu0 %v568_v8  ;;  %300 = vperm.xlu1 %483, %v268_v3  }
  0x1e   : > { %280 = vperm.xlu0 %481, %v268_v3  }
  0x22   : > { %484 = vset.pattern.permute.xlu0 %v567_v7 }
  0x93   : > { %v291_v15 = vpop.permute.xlu1 %290 }
  0x94   : > { %v272_v11 = vpop.permute.xlu0 %271 }
  0x98   : > { %v301_v26 = vpop.permute.xlu1 %300 }
  0x99   : > { %v281_v18 = vpop.permute.xlu0 %280 }
  0xd9   : > { %v264_v17 = vpop.f32.mrf.mxu0 }
  0xda   : > { %v277_v19 = vrot.slane %v264_v17, %v276_v12  ;;  %v296_v20 = vrot.slane %v264_v17, %v295_v13  ;;  %v286_v21 = vrot.slane %v264_v17, %v285_v14  ;;  %v306_v23 = vrot.slane %v264_v17, %v305_v16 }
  0xdb   : > { %v418_v22 = vpop.f32.mrf.mxu0 }
  0xdc   : > { %v278_v24 = vmul.f32 %v277_v19, %v272_v11  ;;  %v287_v25 = vmul.f32 %v286_v21, %v281_v18  ;;  %v297_v28 = vmul.f32 %v296_v20, %v291_v15  ;;  %v307_v29 = vmul.f32 %v306_v23, %v301_v26 }
  0xde   : > { %v288_v27 = vadd.f32 %v287_v25, %v278_v24 }
  0xe0   : > { %v298_v30 = vadd.f32 %v297_v28, %v288_v27 }
  0xe2   : > { %v308_v31 = vadd.f32 %v307_v29, %v298_v30 }
  0xe4   : > { %310 = vst.msk [vmem:[%s183_s19] sm:$0xff] %vm309_vm2, %v308_v31 }
  0xe5   : > { %498 = shalt.err (!%p495_p5)
}
  0xe6   : > { %s499_s5 = scalar_lea.hbm %s324_s27, 128  ;;  %s503_s8 = scalar_lea.hbm %s701_s3, 256 }
  0xe7   : > { %p500_p6 = scmp.ne.s32.totalorder %s324_s27, %s499_s5  ;;  %p504_p10 = scmp.lt.s32.totalorder %s324_s27, %s701_s3 }
  0xe8   : > { %p505_p11 = scmp.lt.s32.totalorder %s503_s8, %s499_s5 }
  0xe9   : > { %p501_p7 = pnand %p500_p6, %p630_p4 }
  0xea   : > { %p506_p12 = por %p505_p11, %p504_p10 }
  0xeb   : > { %p502_p9 = pneg %p501_p7 }
  0xed   : > { %p507_p13 = pnand %p506_p12, %p502_p9 }
  0xef   : > { %510 = shalt.err (!%p507_p13)
}
  0xf0   : > { %419 = dma.vmem_to_hbm [thread:$0]  (%p630_p4), %s327_s21, 128, %s324_s27, %s312_s28  }
  0xf1 PF: > { %p425_p0 = scmp.ge.s32.totalorder %s561_s17, 2  ;;  %s338_s11 = sand.u32 1, %s541_s12  }
  0xf2   : > { %s339_s18 = scalar_lea.sflag [#allocation3], %s338_s11 }
  0xf3   : > { %p422_p1 = pnand %p425_p0, %p637_p8 }
  0xf5   : > { %p423_p2 = pneg %p422_p1 }
  0xf7   : > { %536 = dma.done.wait (%p423_p2), %s339_s18, 128  }
  0xf8   : > { %538 = vsyncadd (%p423_p2), %s339_s18, 4294967168  ;;  %s16_s17 = sadd.s32 1, %s561_s17   ;;  %s704_s12 = smov %s545_s13 }
  0xf9   : > { %p13_p3 = scmp.ge.s32.totalorder %s16_s17, 4   ;;  %s705_s13 = smov %s549_s14 }
  0xfa   : > { %s706_s14 = smov %s643_s25  ;;  %s707_s15 = smov %s557_s16 }
  0xfb   : > { %s708_s16 = smov %s710_s20  ;;  %15 = sbr.rel (!%p13_p3) target bundleno = 4 (0x4), region = 67 }
 0x100   :  { %344 = vsyncpa [#allocation3], 1 }
 0x101   :  { %346 = vsyncpa [#allocation3 + $0x1], 1 }

</bundles_post_ra>
